<compile_context>
chip_gen: v7x
topology: tpu7x:2x2x1
jax: 0.10.0
libtpu: 0.0.40
codegen_flags: <defaults>
</compile_context>

<pallas_src>
import jax
import jax.numpy as jnp
from jax.experimental import pallas as pl
from jax.experimental.pallas import tpu as pltpu


def _sigmoid(z):
    # exp and the approximate reciprocal both live on the EUP slot (no VPU divide).
    return pl.reciprocal(1.0 + jnp.exp(-z), approx=True)


def _mlp_kernel(x_ref, w1_ref, b1_ref, w2_ref, b2_ref, o_ref):
    """One batch tile: sigmoid(fc2(sigmoid(fc1(x)))), computed with batch on lanes."""
    # fc1 on the MXU: (H, D) contracted with (TB, D) on D -> (H, TB).
    ht = jax.lax.dot_general(
        w1_ref[...], x_ref[...],
        dimension_numbers=(((1,), (1,)), ((), ())),
        preferred_element_type=jnp.float32,
    )
    h = _sigmoid(ht + b1_ref[...])                               # (H, TB) + (H, 1)

    # fc2 (K=10, N=1): VPU multiply + sublane (axis=0) reduce — keep it off the MXU.
    logits = jnp.sum(h * w2_ref[...], axis=0, keepdims=True)     # (1, TB)
    o_ref[...] = _sigmoid(logits + b2_ref[0])                    # lane-dense store


def _round_up(n, m):
    return ((n + m - 1) // m) * m


def _pick_batch_tile(batch, d):
    """Rows per batch tile: a multiple of 128 (lane-dense output blocks), sized so the
    double-buffered (tb, D) f32 x tiles stay ~<= 8 MiB total (accounting for lane
    padding when D < 128), while keeping >= ~8 grid steps for large batches so the
    'parallel' axis feeds both v7x TensorCores and the pipeline has steps to overlap."""
    lanes = _round_up(max(d, 1), 128)          # VMEM rows are lane-padded to 128
    bytes_per_row = 4 * lanes                  # f32
    tb_vmem = (4 * 1024 * 1024) // bytes_per_row   # ~4 MiB per x buffer
    tb_split = pl.cdiv(batch, 8)               # aim for >= ~8 grid steps
    tb = min(tb_vmem, tb_split, batch)
    # NOTE: for extremely large input_size (> ~50k) a K-tiled accumulator grid would be
    # needed; the 128-row floor plus the explicit vmem limit below keeps smaller D honest.
    return max(128, (tb // 128) * 128)


def _vmem_limit_bytes(tb, d):
    lanes = _round_up(max(d, 1), 128)
    need = 2 * tb * lanes * 4          # double-buffered x tiles
    need += 2 * 8 * tb * 4             # double-buffered (1, tb) output tiles (sublane pad)
    need += 4 * 1024 * 1024            # weights/bias blocks + compiler scratch slack
    # v5e's scoped-VMEM default is only 16 MiB — raise it explicitly on every gen.
    return min(max(32 * 1024 * 1024, need), 128 * 1024 * 1024)


def neural_network_forward(x, w1, b1, w2, b2):
    """Pallas TPU implementation of NeuralNetwork.forward.

    x:  (..., input_size) float32 (flattened like torch's x.view(-1, input_size))
    w1: (input_size, 10)  float32 (fc1.weight.T)
    b1: (10,)             float32
    w2: (10, 1)           float32 (fc2.weight.T)
    b2: (1,)              float32
    returns: (B,) float32
    """
    D, H = w1.shape
    x = jnp.asarray(x, jnp.float32).reshape(-1, D)
    B = x.shape[0]

    # Tiny batches: pad rows up to one 128-row tile (<= 16 KiB copy).  Large batches
    # are NOT padded — Pallas clips the ragged last x block, rows are independent,
    # and the padded output columns are sliced off below.
    if B < 128:
        x = jnp.pad(x, ((0, 128 - B), (0, 0)))
    Bk = x.shape[0]

    tb = _pick_batch_tile(Bk, D)
    G = pl.cdiv(Bk, tb)

    w1_hd = jnp.asarray(w1, jnp.float32).T             # (H, D): torch fc1.weight layout
    b1_col = jnp.asarray(b1, jnp.float32).reshape(H, 1)
    w2_col = jnp.asarray(w2, jnp.float32).reshape(H, 1)
    b2_1d = jnp.asarray(b2, jnp.float32).reshape(1)

    out = pl.pallas_call(
        _mlp_kernel,
        out_shape=jax.ShapeDtypeStruct((1, G * tb), jnp.float32),
        grid_spec=pl.GridSpec(
            grid=(G,),
            in_specs=[
                # x: one (tb, D) batch tile per grid step -> double-buffered DMA.
                pl.BlockSpec((tb, D), lambda i: (i, 0)),
                # Weights / biases: constant blocks, stay resident in VMEM across steps.
                pl.BlockSpec((H, D), lambda i: (0, 0)),
                pl.BlockSpec((H, 1), lambda i: (0, 0)),
                pl.BlockSpec((H, 1), lambda i: (0, 0)),
                # fc2 scalar bias lives in SMEM.
                pl.BlockSpec(memory_space=pltpu.MemorySpace.SMEM),
            ],
            # Lane-dense (1, tb) output slab per grid step.
            out_specs=pl.BlockSpec((1, tb), lambda i: (0, i)),
        ),
        compiler_params=pltpu.CompilerParams(
            # Batch tiles are independent -> shard grid across TensorCores on v7x.
            dimension_semantics=("parallel",),
            vmem_limit_bytes=_vmem_limit_bytes(tb, D),
        ),
        cost_estimate=pl.CostEstimate(
            flops=2 * Bk * D * H + 5 * Bk * H + 3 * Bk,
            transcendentals=2 * Bk * (H + 1),
            bytes_accessed=4 * (Bk * D + Bk + D * H + 3 * H + 1),
        ),
    )(x, w1_hd, b1_col, w2_col, b2_1d)

    # Matches torch's x.squeeze() on a (B, 1) result for B > 1.
    # (Edge case: for B == 1 torch returns a 0-d scalar; we return shape (1,).)
    return out[0, :B]


if __name__ == "__main__":
    # Small shapes consistent with the module: input_size features, hidden 10, output 1.
    batch = 8
    input_size = 32
    hidden = 10

    key = jax.random.PRNGKey(0)
    kx, kw1, kb1, kw2, kb2 = jax.random.split(key, 5)

    x = jax.random.normal(kx, (batch, input_size), dtype=jnp.float32)

    lim1 = 1.0 / jnp.sqrt(jnp.float32(input_size))
    lim2 = 1.0 / jnp.sqrt(jnp.float32(hidden))
    w1 = jax.random.uniform(kw1, (input_size, hidden), jnp.float32, -lim1, lim1)
    b1 = jax.random.uniform(kb1, (hidden,), jnp.float32, -lim1, lim1)
    w2 = jax.random.uniform(kw2, (hidden, 1), jnp.float32, -lim2, lim2)
    b2 = jax.random.uniform(kb2, (1,), jnp.float32, -lim2, lim2)

    out = neural_network_forward(x, w1, b1, w2, b2)
    out = jax.block_until_ready(out)

    # Pure-JAX reference check.  Tolerance allows for the EUP approximate reciprocal
    # (pl.reciprocal(..., approx=True)) used inside the kernel's sigmoid.
    ref = jax.nn.sigmoid(jax.nn.sigmoid(x @ w1 + b1) @ w2 + b2).reshape(batch)
    assert out.shape == (batch,)
    assert jnp.allclose(out, ref, atol=5e-3, rtol=5e-3), (out, ref)

    print("KERNEL_OK")
</pallas_src>

<mosaic_0001>
module attributes {stable_mosaic.version = 11 : i64} {
  func.func @_mlp_kernel(%arg0: i32, %arg1: memref<128x32xf32, #tpu.memory_space<vmem>>, %arg2: memref<10x32xf32, #tpu.memory_space<vmem>>, %arg3: memref<10x1xf32, #tpu.memory_space<vmem>>, %arg4: memref<10x1xf32, #tpu.memory_space<vmem>>, %arg5: memref<1xf32, #tpu.memory_space<smem>>, %arg6: memref<1x128xf32, #tpu.memory_space<vmem>>) attributes {dimension_semantics = [#tpu.dimension_semantics<parallel>], iteration_bounds = array<i64: 1>, scalar_prefetch = 0 : i64, scratch_operands = 0 : i64, tpu.core_type = #tpu.core_type<tc>, window_params = [{transform_indices = @transform_0, window_bounds = array<i64: 128, 32>}, {pipeline_mode = #tpu.pipeline_mode<synchronous>, transform_indices = @transform_1, window_bounds = array<i64: 10, 32>}, {pipeline_mode = #tpu.pipeline_mode<synchronous>, transform_indices = @transform_2, window_bounds = array<i64: 10, 1>}, {pipeline_mode = #tpu.pipeline_mode<synchronous>, transform_indices = @transform_3, window_bounds = array<i64: 10, 1>}, {transform_indices = @transform_4, window_bounds = array<i64: 1>}, {transform_indices = @transform_5, window_bounds = array<i64: 1, 128>}]} {
    %c0 = arith.constant 0 : index
    %c0_0 = arith.constant 0 : index
    %0 = vector.load %arg2[%c0, %c0_0] : memref<10x32xf32, #tpu.memory_space<vmem>>, vector<10x32xf32>
    %c0_1 = arith.constant 0 : index
    %c0_2 = arith.constant 0 : index
    %1 = vector.load %arg1[%c0_1, %c0_2] : memref<128x32xf32, #tpu.memory_space<vmem>>, vector<128x32xf32>
    %cst = arith.constant dense<0.000000e+00> : vector<10x128xf32>
    %2 = tpu.matmul %0, %1, %cst {dimension_numbers = #tpu.dot_dimension_numbers<[1], [1], [0], [0], [0, 0, 1, 0], [], []>} : vector<10x32xf32>, vector<128x32xf32>, vector<10x128xf32> -> vector<10x128xf32>
    %c0_3 = arith.constant 0 : index
    %c0_4 = arith.constant 0 : index
    %3 = vector.load %arg3[%c0_3, %c0_4] : memref<10x1xf32, #tpu.memory_space<vmem>>, vector<10x1xf32>
    %4 = vector.broadcast %3 : vector<10x1xf32> to vector<10x128xf32>
    %5 = arith.addf %2, %4 : vector<10x128xf32>
    %cst_5 = arith.constant 0.000000e+00 : f32
    %6 = vector.broadcast %cst_5 : f32 to vector<10x128xf32>
    %7 = arith.subf %6, %5 : vector<10x128xf32>
    %8 = math.exp %7 : vector<10x128xf32>
    %cst_6 = arith.constant 1.000000e+00 : f32
    %9 = vector.broadcast %cst_6 : f32 to vector<10x128xf32>
    %10 = arith.addf %9, %8 : vector<10x128xf32>
    %11 = tpu.reciprocal %10 {approx = true} : vector<10x128xf32> -> vector<10x128xf32>
    %c0_7 = arith.constant 0 : index
    %c0_8 = arith.constant 0 : index
    %12 = vector.load %arg4[%c0_7, %c0_8] : memref<10x1xf32, #tpu.memory_space<vmem>>, vector<10x1xf32>
    %13 = vector.broadcast %12 : vector<10x1xf32> to vector<10x128xf32>
    %14 = arith.mulf %11, %13 : vector<10x128xf32>
    %cst_9 = arith.constant dense<0.000000e+00> : vector<128xf32>
    %15 = vector.multi_reduction <add>, %14, %cst_9 [0] : vector<10x128xf32> to vector<128xf32>
    %16 = vector.shape_cast %15 : vector<128xf32> to vector<1x128xf32>
    %c0_10 = arith.constant 0 : index
    %17 = memref.load %arg5[%c0_10] : memref<1xf32, #tpu.memory_space<smem>>
    %18 = vector.broadcast %17 : f32 to vector<1x128xf32>
    %19 = arith.addf %16, %18 : vector<1x128xf32>
    %cst_11 = arith.constant 0.000000e+00 : f32
    %20 = vector.broadcast %cst_11 : f32 to vector<1x128xf32>
    %21 = arith.subf %20, %19 : vector<1x128xf32>
    %22 = math.exp %21 : vector<1x128xf32>
    %cst_12 = arith.constant 1.000000e+00 : f32
    %23 = vector.broadcast %cst_12 : f32 to vector<1x128xf32>
    %24 = arith.addf %23, %22 : vector<1x128xf32>
    %25 = tpu.reciprocal %24 {approx = true} : vector<1x128xf32> -> vector<1x128xf32>
    %c0_13 = arith.constant 0 : index
    %c0_14 = arith.constant 0 : index
    %26 = vector.load %arg6[%c0_13, %c0_14] : memref<1x128xf32, #tpu.memory_space<vmem>>, vector<1x128xf32>
    tpu.vector_store %arg6[%c0_13, %c0_14], %25 {strides = array<i32>} : memref<1x128xf32, #tpu.memory_space<vmem>>, vector<1x128xf32>,
    return
  }
  func.func @transform_0(%arg0: i32) -> (i32, i32) {
    %c0_i32 = arith.constant 0 : i32
    %c0_i32_0 = arith.constant 0 : i32
    return %arg0, %c0_i32 : i32, i32
  }
  func.func @transform_1(%arg0: i32) -> (i32, i32) {
    %c0_i32 = arith.constant 0 : i32
    %c0_i32_0 = arith.constant 0 : i32
    %c0_i32_1 = arith.constant 0 : i32
    return %c0_i32, %c0_i32_0 : i32, i32
  }
  func.func @transform_2(%arg0: i32) -> (i32, i32) {
    %c0_i32 = arith.constant 0 : i32
    %c0_i32_0 = arith.constant 0 : i32
    %c0_i32_1 = arith.constant 0 : i32
    return %c0_i32, %c0_i32_0 : i32, i32
  }
  func.func @transform_3(%arg0: i32) -> (i32, i32) {
    %c0_i32 = arith.constant 0 : i32
    %c0_i32_0 = arith.constant 0 : i32
    %c0_i32_1 = arith.constant 0 : i32
    return %c0_i32, %c0_i32_0 : i32, i32
  }
  func.func @transform_4(%arg0: i32) -> i32 {
    %c0_i32 = arith.constant 0 : i32
    %c0_i32_0 = arith.constant 0 : i32
    return %c0_i32 : i32
  }
  func.func @transform_5(%arg0: i32) -> (i32, i32) {
    %c0_i32 = arith.constant 0 : i32
    %c0_i32_0 = arith.constant 0 : i32
    return %c0_i32, %arg0 : i32, i32
  }
}

</mosaic_0001>

<bundles_post_ra>
// kernel: tpu_custom_call.1
= control target key start
LH: loop header
LB: loop body
LE: loop exit
PB: predicated region body
PF: predicated region fallthrough
CT: control target
= control target key end

     0   :  { %vm52_vm0 = vcmask 261120   ;;  %v397_v6 = vmov 0   ;;  %s550_s0 = inlined_call_operand.vmem [shape: f32[128,32], index: 0, kind: input, shape index: {}]   ;;  %s551_s1 = inlined_call_operand.vmem [shape: f32[10,32], index: 1, kind: input, shape index: {}]   ;;  %s552_s2 = inlined_call_operand.vmem [shape: f32[10,1], index: 2, kind: input, shape index: {}]   ;;  %s553_s3 = inlined_call_operand.vmem [shape: f32[10,1], index: 3, kind: input, shape index: {}]   ;;  %s554_s4 = inlined_call_operand.<no memory space> [shape: f32[1], index: 4, kind: input, shape index: {}]   ;;  %s555_s5 = inlined_call_operand.hbm [shape: f32[1,128], index: 5, kind: output, shape index: {}]  }
   0x1   :  { %v24_v0 = vld [vmem:[%s550_s0] sm:$0xff]  ;;  %v25_v1 = vld [vmem:[%s550_s0 + $0x8] sm:$0xff]  ;;  %v26_v2 = vld [vmem:[%s550_s0 + $0x10] sm:$0xff]  ;;  %359 = vset.pattern.permute.xlu0 %v397_v6  ;;  %360 = vset.pattern.permute.xlu1 %v397_v6 }
   0x2   :  { %v309_v3 = vpack.c.bf16 %v25_v1, %v24_v0  ;;  %vm440_vm1 = vmpackc.low %vm52_vm0, %vm52_vm0  ;;  %v27_v5 = vld [vmem:[%s550_s0 + $0x18] sm:$0xff]  ;;  %v22_v8 = vld [vmem:[%s551_s1] sm:$0xff] }
   0x3   :  { %v315_v7 = vpack.c.bf16 %v27_v5, %v26_v2  ;;  %v28_v9 = vld [vmem:[%s550_s0 + $0x20] sm:$0xff]  ;;  %v29_v10 = vld [vmem:[%s550_s0 + $0x28] sm:$0xff]  ;;  %306 = vmatprep.mubr.msk.f32.mxu0 %vm52_vm0, %v22_v8 }
   0x4   :  { %311 = vmatprep.subr.msk.bf16.mxu0 %vm440_vm1, %v309_v3  ;;  %v41_v11 = vld [vmem:[%s552_s2 + $0x8] sm:$0x3] }
   0x5   :  { %314 = vmatpush3.bf16.xpose.msk.msra.mxu0 %vm440_vm1, %v309_v3  ;;  %49 = vperm.xlu0 %359, %v41_v11   ;;  %v193_v12 = vld [vmem:[%s553_s3 + $0x8] sm:$0x3] }
   0x6   :  { %317 = vmatprep.subr.msk.bf16.mxu0 %vm440_vm1, %v315_v7 }
   0x7   :  { %11 = vsyncpa [#allocation4], 0  ;;  %v40_v13 = vld [vmem:[%s552_s2] sm:$0xff]  ;;  %201 = vperm.xlu1 %360, %v193_v12   ;;  %v321_v14 = vpack.c.bf16 %v29_v10, %v28_v9  ;;  %v30_v16 = vld [vmem:[%s550_s0 + $0x30] sm:$0xff]  ;;  %vm206_vm2 = vcmask 1041408   ;;  %v216_v59 = vstv %s554_s4  ;;  %s398_s10 = smov [#allocation3]  }
   0x8   :  { %v192_v15 = vld [vmem:[%s553_s3] sm:$0xff]  ;;  %v31_v17 = vld [vmem:[%s550_s0 + $0x38] sm:$0xff]  ;;  %v33_v20 = vld [vmem:[%s550_s0 + $0x48] sm:$0xff]  ;;  %s230_s11 = sshll.u32 %s398_s10, 4  ;;  %s231_s11 = int_to_ptr.vmem [resolvable:$true] %s230_s11 }
   0x9   :  { %44 = vperm.xlu0 %359, %v40_v13   ;;  %v327_v18 = vpack.c.bf16 %v31_v17, %v30_v16  ;;  %v32_v19 = vld [vmem:[%s550_s0 + $0x40] sm:$0xff]  ;;  %v34_v22 = vld [vmem:[%s550_s0 + $0x50] sm:$0xff]  ;;  %v35_v23 = vld [vmem:[%s550_s0 + $0x58] sm:$0xff]  ;;  %s373_s12 = scalar_lea.vmem %s231_s11, 16  ;;  %s377_s13 = scalar_lea.vmem %s231_s11, 32 }
   0xa   :  { %v333_v21 = vpack.c.bf16 %v33_v20, %v32_v19  ;;  %v339_v24 = vpack.c.bf16 %v35_v23, %v34_v22  ;;  %v36_v25 = vld [vmem:[%s550_s0 + $0x60] sm:$0xff]  ;;  %v37_v26 = vld [vmem:[%s550_s0 + $0x68] sm:$0xff]  ;;  %v38_v28 = vld [vmem:[%s550_s0 + $0x70] sm:$0xff]  ;;  %p374_p0 = scmp.ne.s32.totalorder %s231_s11, %s373_s12  ;;  %p378_p1 = scmp.lt.s32.totalorder %s231_s11, %s231_s11 }
   0xb   :  { %196 = vperm.xlu1 %360, %v192_v15   ;;  %v345_v27 = vpack.c.bf16 %v37_v26, %v36_v25  ;;  %v39_v29 = vld [vmem:[%s550_s0 + $0x78] sm:$0xff]  ;;  %v23_v31 = vld [vmem:[%s551_s1 + $0x8] sm:$0x3]  ;;  %p379_p2 = scmp.lt.s32.totalorder %s377_s13, %s373_s12 }
   0xc   :  { %v351_v30 = vpack.c.bf16 %v39_v29, %v38_v28 }
   0xd   :  { %320 = vmatpush3.bf16.xpose.msk.msra.mxu0 %vm440_vm1, %v315_v7  ;;  %p380_p3 = por %p379_p2, %p378_p1 }
   0xe   :  { %323 = vmatprep.subr.msk.bf16.mxu0 %vm440_vm1, %v321_v14 }
   0xf   :  { %p381_p4 = pnand %p380_p3, %p374_p0 }
  0x15   :  { %326 = vmatpush3.bf16.xpose.msk.msra.mxu0 %vm440_vm1, %v321_v14 }
  0x16   :  { %329 = vmatprep.subr.msk.bf16.mxu0 %vm440_vm1, %v327_v18 }
  0x1d   :  { %332 = vmatpush3.bf16.xpose.msk.msra.mxu0 %vm440_vm1, %v327_v18 }
  0x1e   :  { %335 = vmatprep.subr.msk.bf16.mxu0 %vm440_vm1, %v333_v21 }
  0x25   :  { %338 = vmatpush3.bf16.xpose.msk.msra.mxu0 %vm440_vm1, %v333_v21 }
  0x26   :  { %341 = vmatprep.subr.msk.bf16.mxu0 %vm440_vm1, %v339_v24 }
  0x2d   :  { %344 = vmatpush3.bf16.xpose.msk.msra.mxu0 %vm440_vm1, %v339_v24 }
  0x2e   :  { %347 = vmatprep.subr.msk.bf16.mxu0 %vm440_vm1, %v345_v27 }
  0x35   :  { %350 = vmatpush3.bf16.xpose.msk.msra.mxu0 %vm440_vm1, %v345_v27 }
  0x36   :  { %353 = vmatprep.subr.msk.bf16.mxu0 %vm440_vm1, %v351_v30 }
  0x3d   :  { %356 = vmatpush3.bf16.xpose.msk.msra.mxu0 %vm440_vm1, %v351_v30 }
  0x44   :  { %307 = vmatmul.mubr.msk.f32.vlgmr.msra.gmra.mrb[0].mxu0 %vm52_vm0, %v23_v31 }
  0x84   :  { %v50_v32 = vpop.permute.xlu0 %49 }
  0x86   :  { %v202_v46 = vpop.permute.xlu1 %201 }
  0x88   :  { %v45_v34 = vpop.permute.xlu0 %44 }
  0x8a   :  { %v197_v50 = vpop.permute.xlu1 %196 }
 0x117   :  { %v308_v33 = vpop.f32.mrb[0].mxu0 }
 0x118   :  { %v179_v35 = vadd.f32 %v308_v33, %v50_v32  ;;  %v173_v36 = vpop.f32.mrb[1].mxu0 }
 0x119   :  { %v174_v37 = vadd.f32 %v173_v36, %v45_v34 }
 0x11a   :  { %v183_v38 = vsub.f32 0.0, %v179_v35 }
 0x11b   :  { %v182_v39 = vsub.f32 0.0, %v174_v37 }
 0x11c   :  { %v186_v40 = vmul.f32 1.442695, %v183_v38 }
 0x11d   :  { %v184_v41 = vmul.f32 1.442695, %v182_v39 }
 0x11e   :  { %361 = vpow2.f32 %v186_v40 }
 0x11f   :  { %363 = vpow2.f32 %v184_v41 }
 0x128   :  { %v362_v42 = vpop.eup %361 }
 0x129   :  { %v364_v43 = vpop.eup %363  ;;  %v189_v44 = vadd.f32 1.0, %v362_v42 }
 0x12a   :  { %v188_v45 = vadd.f32 1.0, %v364_v43 }
 0x12b   :  { %365 = vrcp.f32 %v189_v44 }
 0x12c   :  { %367 = vrcp.f32 %v188_v45 }
 0x135   :  { %v366_v47 = vpop.eup %365 }
 0x136   :  { %v368_v48 = vpop.eup %367  ;;  %v205_v49 = vmul.f32 %v366_v47, %v202_v46 }
 0x137   :  { %v204_v51 = vmul.f32 %v368_v48, %v197_v50 }
 0x138   :  { %v207_v52 = vsel %vm206_vm2, %v205_v49, 0.0 }
 0x139   :  { %v208_v53 = vadd.f32 %v207_v52, %v204_v51 }
 0x13b   :  { %v209_v54 = vrot.slane %v208_v53, 4 }
 0x13d   :  { %v210_v55 = vadd.f32 %v209_v54, %v208_v53 }
 0x13f   :  { %v211_v56 = vrot.slane %v210_v55, 2 }
 0x141   :  { %v212_v57 = vadd.f32 %v211_v56, %v210_v55 }
 0x143   :  { %v213_v58 = vrot.slane %v212_v57, 1 }
 0x145   :  { %v214_v60 = vadd.f32 %v213_v58, %v212_v57 }
 0x147   :  { %v217_v61 = vadd.f32 %v216_v59, %v214_v60 }
 0x149   :  { %v218_v62 = vsub.f32 0.0, %v217_v61 }
 0x14b   :  { %v219_v63 = vmul.f32 1.442695, %v218_v62 }
 0x14d   :  { %369 = vpow2.f32 %v219_v63 }
 0x157   :  { %v370_v0 = vpop.eup %369 }
 0x158   :  { %v221_v1 = vadd.f32 1.0, %v370_v0 }
 0x15a   :  { %371 = vrcp.f32 %v221_v1 }
 0x164   :  { %v372_v2 = vpop.eup %371 }
 0x165   :  { %223 = vst [vmem:[#allocation3] sm:$0x1] %v372_v2 }
 0x166   :  { %384 = shalt.err (!%p381_p4)
}
 0x167   :  { %s385_s15 = scalar_lea.hbm %s555_s5, 16 }
 0x168   :  { %p386_p5 = scmp.ne.s32.totalorder %s555_s5, %s385_s15  ;;  %p389_p6 = scmp.lt.u32.totalorder %s385_s15, %s555_s5 }
 0x16a   :  { %p391_p7 = pnand %p389_p6, %p386_p5 }
 0x16c   :  { %394 = shalt.err (!%p391_p7)
}
 0x16d   :  { %233 = dma.vmem_to_hbm [thread:$0]  %s231_s11, 16, %s555_s5, [#allocation4]  }
 0x16e   :  { %395 = dma.done.wait [#allocation4], 16  }
 0x16f   :  { %396 = vsyncadd [#allocation4], 4294967280 }
 0x170   :  { %237 = vsyncpa [#allocation4], 1 }

</bundles_post_ra>
